<compile_context>
chip_gen: v6e
topology: v6e:2x2x1
jax: 0.10.0
libtpu: 0.0.40
codegen_flags: <defaults>
</compile_context>

<pallas_src>
import jax
import jax.numpy as jnp
from jax import lax
from jax.experimental import pallas as pl
from jax.experimental.pallas import tpu as pltpu

IN_FEATURES = 512
HIDDEN = 512
OUT_FEATURES = 512
DROP_P = 0.25


def _mlp_body(x, w1, b1, w2, b2, mask):
    # x: (TB, K) bf16; w1: (H, K), w2: (N, H) bf16 in nn.Linear (out, in) layout.
    # Contract the last dims of both operands -> x @ w^T, f32 accumulation.
    h = lax.dot_general(
        x, w1, dimension_numbers=(((1,), (1,)), ((), ())),
        preferred_element_type=jnp.float32,
    )
    h = h + b1
    if mask is not None:
        # Dropout (training semantics): zero with prob p, scale by 1/(1-p).
        h = h * (mask.astype(jnp.float32) * (1.0 / (1.0 - DROP_P)))
    h = h.astype(jnp.bfloat16)  # halve vreg/VMEM traffic feeding the 2nd matmul
    y = lax.dot_general(
        h, w2, dimension_numbers=(((1,), (1,)), ((), ())),
        preferred_element_type=jnp.float32,
    )
    return y + b2


def _mlp_kernel_train(x_ref, mask_ref, w1_ref, b1_ref, w2_ref, b2_ref, o_ref):
    y = _mlp_body(x_ref[...], w1_ref[...], b1_ref[...], w2_ref[...], b2_ref[...],
                  mask_ref[...])
    o_ref[...] = y.astype(o_ref.dtype)


def _mlp_kernel_eval(x_ref, w1_ref, b1_ref, w2_ref, b2_ref, o_ref):
    y = _mlp_body(x_ref[...], w1_ref[...], b1_ref[...], w2_ref[...], b2_ref[...],
                  None)
    o_ref[...] = y.astype(o_ref.dtype)


def fully_connected(x, w1, b1, w2, b2, *, key=None, training=True):
    """x: (B, 512). w1, w2: (out, in) like nn.Linear.weight. b1, b2: (out,).

    Pass weights pre-cast to bf16 (store them once in bf16) to avoid any
    per-call cast traffic; other dtypes are cast here.
    """
    B, F = x.shape
    assert F == IN_FEATURES

    out_dtype = x.dtype
    x_bf = x.astype(jnp.bfloat16)
    w1_bf = jnp.asarray(w1).astype(jnp.bfloat16)  # (512, 512) — layout kept, no .T
    w2_bf = jnp.asarray(w2).astype(jnp.bfloat16)
    b1r = jnp.asarray(b1, jnp.float32).reshape(1, HIDDEN)
    b2r = jnp.asarray(b2, jnp.float32).reshape(1, OUT_FEATURES)

    # Batch tiling: 512 rows/tile keeps the MXU full (multiple of 256/128) and
    # the bf16 working set tiny vs every generation's VMEM; small batches run
    # as a single full-array block.
    tile_b = 512 if B >= 512 else B
    grid = (pl.cdiv(B, tile_b),)

    batch_map = lambda i: (i, 0)
    const_map = lambda i: (0, 0)

    in_specs = [pl.BlockSpec((tile_b, IN_FEATURES), batch_map)]
    inputs = [x_bf]
    if training:
        if key is None:
            key = jax.random.PRNGKey(0)
        # Host-side keep mask; per-tile slices are automatically independent.
        # TODO(synk): switch to the in-kernel hardware PRNG (pltpu.prng_seed /
        # prng_random_bits) when interpret-mode support is not required.
        keep = jax.random.bernoulli(key, 1.0 - DROP_P, (B, HIDDEN))
        inputs.append(keep.astype(jnp.bfloat16))
        in_specs.append(pl.BlockSpec((tile_b, HIDDEN), batch_map))
        kernel = _mlp_kernel_train
    else:
        kernel = _mlp_kernel_eval

    # Weights / biases: constant index maps -> VMEM-resident across the grid.
    in_specs += [
        pl.BlockSpec((HIDDEN, IN_FEATURES), const_map),
        pl.BlockSpec((1, HIDDEN), const_map),
        pl.BlockSpec((OUT_FEATURES, HIDDEN), const_map),
        pl.BlockSpec((1, OUT_FEATURES), const_map),
    ]
    inputs += [w1_bf, b1r, w2_bf, b2r]

    flops = 2 * B * IN_FEATURES * HIDDEN + 2 * B * HIDDEN * OUT_FEATURES
    bytes_accessed = (
        w1_bf.size * 2 + w2_bf.size * 2 + b1r.size * 4 + b2r.size * 4
        + x_bf.size * 2
        + B * OUT_FEATURES * jnp.dtype(out_dtype).itemsize
        + (B * HIDDEN * 2 if training else 0)
    )

    return pl.pallas_call(
        kernel,
        out_shape=jax.ShapeDtypeStruct((B, OUT_FEATURES), out_dtype),
        grid_spec=pltpu.PrefetchScalarGridSpec(
            num_scalar_prefetch=0,
            grid=grid,
            in_specs=in_specs,
            out_specs=pl.BlockSpec((tile_b, OUT_FEATURES), batch_map),
        ),
        compiler_params=pltpu.CompilerParams(
            dimension_semantics=("parallel",),  # v7x: shard batch tiles across TCs
        ),
        cost_estimate=pl.CostEstimate(
            flops=int(flops), transcendentals=0,
            bytes_accessed=int(bytes_accessed)),
    )(*inputs)


def _init_linear(key, out_f, in_f):
    # Deterministic init mimicking nn.Linear default: U(-1/sqrt(in), 1/sqrt(in)).
    kw, kb = jax.random.split(key)
    bound = 1.0 / jnp.sqrt(jnp.float32(in_f))
    w = jax.random.uniform(kw, (out_f, in_f), jnp.float32, -bound, bound)
    b = jax.random.uniform(kb, (out_f,), jnp.float32, -bound, bound)
    return w, b


if __name__ == "__main__":
    root = jax.random.PRNGKey(0)
    k_x, k_l1, k_l2, k_drop = jax.random.split(root, 4)

    B = 8
    x = jax.random.normal(k_x, (B, IN_FEATURES), jnp.float32)
    w1, b1 = _init_linear(k_l1, HIDDEN, IN_FEATURES)
    w2, b2 = _init_linear(k_l2, OUT_FEATURES, HIDDEN)

    # Store weights in bf16 once (what the kernel consumes) so no per-call
    # transpose or cast traffic hits the weight matrices.
    w1_bf = w1.astype(jnp.bfloat16)
    w2_bf = w2.astype(jnp.bfloat16)

    # Training-mode forward (dropout active).
    out_train = fully_connected(x, w1_bf, b1, w2_bf, b2, key=k_drop, training=True)
    jax.block_until_ready(out_train)
    assert out_train.shape == (B, OUT_FEATURES)

    # Eval-mode forward (dropout = identity) — check against a pure-JAX
    # reference evaluated at the same bf16 operand precision (f32 accumulate).
    out_eval = fully_connected(x, w1_bf, b1, w2_bf, b2, training=False)
    jax.block_until_ready(out_eval)
    xr = x.astype(jnp.bfloat16).astype(jnp.float32)
    w1r = w1_bf.astype(jnp.float32)
    w2r = w2_bf.astype(jnp.float32)
    h_ref = xr @ w1r.T + b1
    ref = h_ref.astype(jnp.bfloat16).astype(jnp.float32) @ w2r.T + b2
    assert out_eval.shape == (B, OUT_FEATURES)
    assert jnp.allclose(out_eval, ref, atol=3e-2, rtol=3e-2)

    print("KERNEL_OK")
</pallas_src>

<mosaic_0001>
module attributes {stable_mosaic.version = 11 : i64} {
  func.func @_mlp_kernel_train(%arg0: i32, %arg1: memref<8x512xbf16, #tpu.memory_space<vmem>>, %arg2: memref<8x512xbf16, #tpu.memory_space<vmem>>, %arg3: memref<512x512xbf16, #tpu.memory_space<vmem>>, %arg4: memref<1x512xf32, #tpu.memory_space<vmem>>, %arg5: memref<512x512xbf16, #tpu.memory_space<vmem>>, %arg6: memref<1x512xf32, #tpu.memory_space<vmem>>, %arg7: memref<8x512xf32, #tpu.memory_space<vmem>>) attributes {dimension_semantics = [#tpu.dimension_semantics<parallel>], iteration_bounds = array<i64: 1>, scalar_prefetch = 0 : i64, scratch_operands = 0 : i64, tpu.core_type = #tpu.core_type<tc>, window_params = [{transform_indices = @transform_0, window_bounds = array<i64: 8, 512>}, {transform_indices = @transform_1, window_bounds = array<i64: 8, 512>}, {pipeline_mode = #tpu.pipeline_mode<synchronous>, transform_indices = @transform_2, window_bounds = array<i64: 512, 512>}, {pipeline_mode = #tpu.pipeline_mode<synchronous>, transform_indices = @transform_3, window_bounds = array<i64: 1, 512>}, {pipeline_mode = #tpu.pipeline_mode<synchronous>, transform_indices = @transform_4, window_bounds = array<i64: 512, 512>}, {pipeline_mode = #tpu.pipeline_mode<synchronous>, transform_indices = @transform_5, window_bounds = array<i64: 1, 512>}, {transform_indices = @transform_6, window_bounds = array<i64: 8, 512>}]} {
    %c0 = arith.constant 0 : index
    %c0_0 = arith.constant 0 : index
    %0 = vector.load %arg1[%c0, %c0_0] : memref<8x512xbf16, #tpu.memory_space<vmem>>, vector<8x512xbf16>
    %c0_1 = arith.constant 0 : index
    %c0_2 = arith.constant 0 : index
    %1 = vector.load %arg3[%c0_1, %c0_2] : memref<512x512xbf16, #tpu.memory_space<vmem>>, vector<512x512xbf16>
    %c0_3 = arith.constant 0 : index
    %c0_4 = arith.constant 0 : index
    %2 = vector.load %arg4[%c0_3, %c0_4] : memref<1x512xf32, #tpu.memory_space<vmem>>, vector<1x512xf32>
    %c0_5 = arith.constant 0 : index
    %c0_6 = arith.constant 0 : index
    %3 = vector.load %arg5[%c0_5, %c0_6] : memref<512x512xbf16, #tpu.memory_space<vmem>>, vector<512x512xbf16>
    %c0_7 = arith.constant 0 : index
    %c0_8 = arith.constant 0 : index
    %4 = vector.load %arg6[%c0_7, %c0_8] : memref<1x512xf32, #tpu.memory_space<vmem>>, vector<1x512xf32>
    %c0_9 = arith.constant 0 : index
    %c0_10 = arith.constant 0 : index
    %5 = vector.load %arg2[%c0_9, %c0_10] : memref<8x512xbf16, #tpu.memory_space<vmem>>, vector<8x512xbf16>
    %cst = arith.constant dense<0.000000e+00> : vector<8x512xf32>
    %6 = tpu.matmul %0, %1, %cst {dimension_numbers = #tpu.dot_dimension_numbers<[1], [1], [0], [0], [0, 0, 1, 0], [], []>} : vector<8x512xbf16>, vector<512x512xbf16>, vector<8x512xf32> -> vector<8x512xf32>
    %7 = vector.broadcast %2 : vector<1x512xf32> to vector<8x512xf32>
    %8 = arith.addf %6, %7 : vector<8x512xf32>
    %9 = arith.extf %5 : vector<8x512xbf16> to vector<8x512xf32>
    %cst_11 = arith.constant 1.33333337 : f32
    %10 = vector.broadcast %cst_11 : f32 to vector<8x512xf32>
    %11 = arith.mulf %9, %10 : vector<8x512xf32>
    %12 = arith.mulf %8, %11 : vector<8x512xf32>
    %13 = arith.truncf %12 : vector<8x512xf32> to vector<8x512xbf16>
    %cst_12 = arith.constant dense<0.000000e+00> : vector<8x512xf32>
    %14 = tpu.matmul %13, %3, %cst_12 {dimension_numbers = #tpu.dot_dimension_numbers<[1], [1], [0], [0], [0, 0, 1, 0], [], []>} : vector<8x512xbf16>, vector<512x512xbf16>, vector<8x512xf32> -> vector<8x512xf32>
    %15 = vector.broadcast %4 : vector<1x512xf32> to vector<8x512xf32>
    %16 = arith.addf %14, %15 : vector<8x512xf32>
    %c0_13 = arith.constant 0 : index
    %c0_14 = arith.constant 0 : index
    %17 = vector.load %arg7[%c0_13, %c0_14] : memref<8x512xf32, #tpu.memory_space<vmem>>, vector<8x512xf32>
    tpu.vector_store %arg7[%c0_13, %c0_14], %16 {strides = array<i32>} : memref<8x512xf32, #tpu.memory_space<vmem>>, vector<8x512xf32>,
    return
  }
  func.func @transform_0(%arg0: i32) -> (i32, i32) {
    %c0_i32 = arith.constant 0 : i32
    %c0_i32_0 = arith.constant 0 : i32
    return %arg0, %c0_i32 : i32, i32
  }
  func.func @transform_1(%arg0: i32) -> (i32, i32) {
    %c0_i32 = arith.constant 0 : i32
    %c0_i32_0 = arith.constant 0 : i32
    return %arg0, %c0_i32 : i32, i32
  }
  func.func @transform_2(%arg0: i32) -> (i32, i32) {
    %c0_i32 = arith.constant 0 : i32
    %c0_i32_0 = arith.constant 0 : i32
    %c0_i32_1 = arith.constant 0 : i32
    return %c0_i32, %c0_i32_0 : i32, i32
  }
  func.func @transform_3(%arg0: i32) -> (i32, i32) {
    %c0_i32 = arith.constant 0 : i32
    %c0_i32_0 = arith.constant 0 : i32
    %c0_i32_1 = arith.constant 0 : i32
    return %c0_i32, %c0_i32_0 : i32, i32
  }
  func.func @transform_4(%arg0: i32) -> (i32, i32) {
    %c0_i32 = arith.constant 0 : i32
    %c0_i32_0 = arith.constant 0 : i32
    %c0_i32_1 = arith.constant 0 : i32
    return %c0_i32, %c0_i32_0 : i32, i32
  }
  func.func @transform_5(%arg0: i32) -> (i32, i32) {
    %c0_i32 = arith.constant 0 : i32
    %c0_i32_0 = arith.constant 0 : i32
    %c0_i32_1 = arith.constant 0 : i32
    return %c0_i32, %c0_i32_0 : i32, i32
  }
  func.func @transform_6(%arg0: i32) -> (i32, i32) {
    %c0_i32 = arith.constant 0 : i32
    %c0_i32_0 = arith.constant 0 : i32
    return %arg0, %c0_i32 : i32, i32
  }
}

</mosaic_0001>

<bundles_post_ra>
// kernel: tpu_custom_call.1
= control target key start
LH: loop header
LB: loop body
LE: loop exit
PB: predicated region body
PF: predicated region fallthrough
CT: control target
= control target key end

     0   :  { %11 = vsyncpa [#allocation3], 0  ;;  %s2942_s0 = inlined_call_operand.hbm [shape: bf16[8,512], index: 0, kind: input, shape index: {}]   ;;  %s2943_s1 = inlined_call_operand.hbm [shape: bf16[8,512], index: 1, kind: input, shape index: {}]   ;;  %s2944_s2 = inlined_call_operand.hbm [shape: bf16[512,512], index: 2, kind: input, shape index: {}]   ;;  %s2945_s3 = inlined_call_operand.vmem [shape: f32[1,512], index: 3, kind: input, shape index: {}]   ;;  %s2946_s4 = inlined_call_operand.hbm [shape: bf16[512,512], index: 4, kind: input, shape index: {}]   ;;  %s2947_s5 = inlined_call_operand.vmem [shape: f32[1,512], index: 5, kind: input, shape index: {}]   ;;  %s2948_s6 = inlined_call_operand.hbm [shape: f32[8,512], index: 6, kind: output, shape index: {}]  }
   0x1   :  { %12 = vsyncpa [#allocation6], 0 }
   0x2   :  { %13 = vsyncpa [#allocation9], 0 }
   0x3   :  { %14 = vsyncpa [#allocation4], 0  ;;  %s2801_s21 = smov [#allocation5]   ;;  %s2802_s23 = smov [#allocation2]  }
   0x4   :  { %s31_s22 = sshll.u32 %s2801_s21, 4  ;;  %s21_s24 = sshll.u32 %s2802_s23, 4  ;;  %s32_s22 = int_to_ptr.vmem [resolvable:$true] %s31_s22  ;;  %s22_s24 = int_to_ptr.vmem [resolvable:$true] %s21_s24 }
   0x5   :  { %s2701_s25 = scalar_lea.vmem %s32_s22, 256  ;;  %p2706_p1 = scmp.lt.s32.totalorder %s32_s22, %s32_s22 }
   0x6   :  { %p2702_p0 = scmp.ne.s32.totalorder %s32_s22, %s2701_s25  ;;  %p2707_p2 = scmp.lt.s32.totalorder %s2701_s25, %s2701_s25 }
   0x8   :  { %p2708_p3 = por %p2707_p2, %p2706_p1 }
   0xa   :  { %p2709_p4 = pnand %p2708_p3, %p2702_p0 }
   0xc   :  { %2712 = shalt.err (!%p2709_p4)
}
   0xd   :  { %34 = dma.hbm_to_vmem [thread:$0]  %s2943_s1, 256, %s32_s22, [#allocation6]  }
   0xe   :  { %s2721_s28 = scalar_lea.vmem %s22_s24, 256  ;;  %p2726_p6 = scmp.lt.s32.totalorder %s22_s24, %s22_s24 }
   0xf   :  { %p2722_p5 = scmp.ne.s32.totalorder %s22_s24, %s2721_s28  ;;  %p2727_p7 = scmp.lt.s32.totalorder %s2721_s28, %s2721_s28 }
  0x11   :  { %p2728_p8 = por %p2727_p7, %p2726_p6 }
  0x13   :  { %p2729_p9 = pnand %p2728_p8, %p2722_p5 }
  0x15   :  { %2732 = shalt.err (!%p2729_p9)
}
  0x16   :  { %24 = dma.hbm_to_vmem [thread:$0]  %s2942_s0, 256, %s22_s24, [#allocation3]  }
  0x17   :  { %s2803_s7 = smov [#allocation7]  }
  0x18   :  { %s40_s8 = sshll.u32 %s2803_s7, 4  ;;  %s41_s8 = int_to_ptr.vmem [resolvable:$true] %s40_s8 }
  0x19   :  { %s2741_s9 = scalar_lea.vmem %s41_s8, 16384  ;;  %p2746_p11 = scmp.lt.s32.totalorder %s41_s8, %s41_s8 }
  0x1a   :  { %p2742_p10 = scmp.ne.s32.totalorder %s41_s8, %s2741_s9  ;;  %p2747_p12 = scmp.lt.s32.totalorder %s2741_s9, %s2741_s9 }
  0x1c   :  { %p2748_p13 = por %p2747_p12, %p2746_p11 }
  0x1e   :  { %p2749_p0 = pnand %p2748_p13, %p2742_p10 }
  0x20   :  { %2752 = shalt.err (!%p2749_p0)
}
  0x21   :  { %s2804_s1 = smov 256   ;;  %s2805_s10 = smov 16  }
  0x22   :  { %46 = dma.hbm_to_vmem [thread:$0]  %s2944_s2, 16384, %s41_s8, [#allocation6], %s2804_s1, %s2804_s1, %s2805_s10  }
  0x23   :  { %s2806_s13 = smov [#allocation8]  }
  0x24   :  { %s54_s14 = sshll.u32 %s2806_s13, 4  ;;  %s55_s14 = int_to_ptr.vmem [resolvable:$true] %s54_s14 }
  0x25   :  { %s2761_s0 = scalar_lea.vmem %s55_s14, 16384  ;;  %p2766_p2 = scmp.lt.s32.totalorder %s55_s14, %s55_s14 }
  0x26   :  { %p2762_p1 = scmp.ne.s32.totalorder %s55_s14, %s2761_s0  ;;  %p2767_p3 = scmp.lt.s32.totalorder %s2761_s0, %s2761_s0 }
  0x28   :  { %p2768_p4 = por %p2767_p3, %p2766_p2 }
  0x2a   :  { %p2769_p5 = pnand %p2768_p4, %p2762_p1 }
  0x2c   :  { %2772 = shalt.err (!%p2769_p5)
}
  0x2d   :  { %60 = dma.hbm_to_vmem [thread:$0]  %s2946_s4, 16384, %s55_s14, [#allocation9], %s2804_s1, %s2804_s1, %s2805_s10  }
  0x2e   :  { %2793 = dma.done.wait [#allocation3], 256  }
  0x2f   :  { %2794 = vsyncadd [#allocation3], 4294967040 }
  0x30   :  { %2795 = dma.done.wait [#allocation6], 16640  }
  0x31   :  { %2796 = vsyncadd [#allocation6], 4294950656 }
  0x32   :  { %2797 = dma.done.wait [#allocation9], 16384  }
  0x33   :  { %2798 = vsyncadd [#allocation9], 4294950912  ;;  %v2305_v0 = vld [vmem:[#allocation7 + $0xe4] ss:$16 sps:$4 sm:$0xff]   ;;  %v2307_v1 = vld [vmem:[#allocation7 + $0xec] ss:$16 sps:$4 sm:$0xff]  }
  0x34   :  { %1012 = vmatprep.subr.bf16.mxu0 %v2305_v0  ;;  %v2309_v2 = vld [vmem:[#allocation7 + $0xe0] ss:$16 sps:$4 sm:$0xff]   ;;  %v2310_v3 = vld [vmem:[#allocation7 + $0xe8] ss:$16 sps:$4 sm:$0xff]   ;;  %1053 = vmatprep.subr.bf16.mxu1 %v2307_v1  ;;  %v2311_v4 = vld [vmem:[#allocation7 + $0xc4] ss:$16 sps:$4 sm:$0xff]  }
  0x35   :  { %1013 = vmatpush1.bf16.xpose.msra.mxu0 %v2309_v2  ;;  %1054 = vmatpush1.bf16.xpose.msra.mxu1 %v2310_v3  ;;  %v2313_v5 = vld [vmem:[#allocation7 + $0xcc] ss:$16 sps:$4 sm:$0xff]   ;;  %v2315_v6 = vld [vmem:[#allocation7 + $0xc0] ss:$16 sps:$4 sm:$0xff]   ;;  %v2316_v7 = vld [vmem:[#allocation7 + $0xc8] ss:$16 sps:$4 sm:$0xff]  }
  0x36   :  { %1014 = vmatprep.subr.bf16.mxu0 %v2311_v4  ;;  %1055 = vmatprep.subr.bf16.mxu1 %v2313_v5  ;;  %v2317_v8 = vld [vmem:[#allocation7 + $0xa4] ss:$16 sps:$4 sm:$0xff]   ;;  %v2319_v9 = vld [vmem:[#allocation7 + $0xac] ss:$16 sps:$4 sm:$0xff]   ;;  %v2321_v10 = vld [vmem:[#allocation7 + $0xa0] ss:$16 sps:$4 sm:$0xff]  }
  0x37   :  { %v2322_v11 = vld [vmem:[#allocation7 + $0xa8] ss:$16 sps:$4 sm:$0xff]   ;;  %v2323_v12 = vld [vmem:[#allocation7 + $0x84] ss:$16 sps:$4 sm:$0xff]   ;;  %v2325_v13 = vld [vmem:[#allocation7 + $0x8c] ss:$16 sps:$4 sm:$0xff]  }
  0x38   :  { %v2327_v14 = vld [vmem:[#allocation7 + $0x80] ss:$16 sps:$4 sm:$0xff]   ;;  %v2328_v15 = vld [vmem:[#allocation7 + $0x88] ss:$16 sps:$4 sm:$0xff]   ;;  %v2329_v16 = vld [vmem:[#allocation7 + $0x64] ss:$16 sps:$4 sm:$0xff]  }
  0x39   :  { %v2331_v17 = vld [vmem:[#allocation7 + $0x6c] ss:$16 sps:$4 sm:$0xff]   ;;  %v2333_v18 = vld [vmem:[#allocation7 + $0x60] ss:$16 sps:$4 sm:$0xff]   ;;  %v2334_v19 = vld [vmem:[#allocation7 + $0x68] ss:$16 sps:$4 sm:$0xff]  }
  0x3a   :  { %v2335_v20 = vld [vmem:[#allocation7 + $0x44] ss:$16 sps:$4 sm:$0xff]   ;;  %v2337_v21 = vld [vmem:[#allocation7 + $0x4c] ss:$16 sps:$4 sm:$0xff]   ;;  %v2339_v22 = vld [vmem:[#allocation7 + $0x40] ss:$16 sps:$4 sm:$0xff]  }
  0x3b   :  { %v2340_v23 = vld [vmem:[#allocation7 + $0x48] ss:$16 sps:$4 sm:$0xff]   ;;  %v2341_v24 = vld [vmem:[#allocation7 + $0x24] ss:$16 sps:$4 sm:$0xff]   ;;  %v2343_v25 = vld [vmem:[#allocation7 + $0x2c] ss:$16 sps:$4 sm:$0xff]  }
  0x3c   :  { %v2855_v26 = vld [vmem:[#allocation2] sm:$0xff]  ;;  %v2861_v28 = vld [vmem:[#allocation2 + $0x8] sm:$0xff] }
  0x3d   :  { %1015 = vmatpush1.bf16.xpose.msra.mxu0 %v2315_v6  ;;  %1056 = vmatpush1.bf16.xpose.msra.mxu1 %v2316_v7  ;;  %v2859_v27 = vcombine.high %v2855_v26, %v2855_v26  ;;  %v2865_v29 = vcombine.high %v2861_v28, %v2861_v28  ;;  %v2345_v30 = vld [vmem:[#allocation7 + $0x20] ss:$16 sps:$4 sm:$0xff]   ;;  %v2346_v31 = vld [vmem:[#allocation7 + $0x28] ss:$16 sps:$4 sm:$0xff]   ;;  %v2347_v32 = vld [vmem:[#allocation7 + $0x4] ss:$16 sps:$4 sm:$0xff]   ;;  %v2871_v7 = vcombine.low %v2855_v26, %v2855_v26 }
  0x3e   :  { %1016 = vmatprep.subr.bf16.mxu0 %v2317_v8  ;;  %1057 = vmatprep.subr.bf16.mxu1 %v2319_v9  ;;  %v2349_v33 = vld [vmem:[#allocation7 + $0xc] ss:$16 sps:$4 sm:$0xff]   ;;  %v2351_v34 = vld [vmem:[#allocation7] ss:$16 sps:$4 sm:$0xff]   ;;  %v2352_v35 = vld [vmem:[#allocation7 + $0x8] ss:$16 sps:$4 sm:$0xff]   ;;  %v2875_v8 = vcombine.low %v2861_v28, %v2861_v28 }
  0x3f   :  { %1044 = vmatprep.mubr.bf16.mxu0 %v2859_v27  ;;  %1085 = vmatprep.mubr.bf16.mxu1 %v2865_v29  ;;  %v2353_v36 = vld [vmem:[#allocation7 + $0x1e4] ss:$16 sps:$4 sm:$0xff]   ;;  %v2355_v37 = vld [vmem:[#allocation7 + $0x1ec] ss:$16 sps:$4 sm:$0xff]   ;;  %v2357_v38 = vld [vmem:[#allocation7 + $0x1e0] ss:$16 sps:$4 sm:$0xff]  }
  0x40   :  { %v2358_v39 = vld [vmem:[#allocation7 + $0x1e8] ss:$16 sps:$4 sm:$0xff]   ;;  %v2359_v40 = vld [vmem:[#allocation7 + $0x1c4] ss:$16 sps:$4 sm:$0xff]   ;;  %v2361_v41 = vld [vmem:[#allocation7 + $0x1cc] ss:$16 sps:$4 sm:$0xff]  }
  0x41   :  { %v2363_v42 = vld [vmem:[#allocation7 + $0x1c0] ss:$16 sps:$4 sm:$0xff]   ;;  %v2364_v43 = vld [vmem:[#allocation7 + $0x1c8] ss:$16 sps:$4 sm:$0xff]   ;;  %v2365_v44 = vld [vmem:[#allocation7 + $0x1a4] ss:$16 sps:$4 sm:$0xff]  }
  0x42   :  { %v2367_v45 = vld [vmem:[#allocation7 + $0x1ac] ss:$16 sps:$4 sm:$0xff]   ;;  %v2369_v46 = vld [vmem:[#allocation7 + $0x1a0] ss:$16 sps:$4 sm:$0xff]   ;;  %v2370_v47 = vld [vmem:[#allocation7 + $0x1a8] ss:$16 sps:$4 sm:$0xff]  }
  0x43   :  { %v2371_v48 = vld [vmem:[#allocation7 + $0x184] ss:$16 sps:$4 sm:$0xff]   ;;  %v2373_v49 = vld [vmem:[#allocation7 + $0x18c] ss:$16 sps:$4 sm:$0xff]   ;;  %v2375_v50 = vld [vmem:[#allocation7 + $0x180] ss:$16 sps:$4 sm:$0xff]  }
  0x44   :  { %v2376_v51 = vld [vmem:[#allocation7 + $0x188] ss:$16 sps:$4 sm:$0xff]   ;;  %v2377_v52 = vld [vmem:[#allocation7 + $0x164] ss:$16 sps:$4 sm:$0xff]   ;;  %v2379_v53 = vld [vmem:[#allocation7 + $0x16c] ss:$16 sps:$4 sm:$0xff]  }
  0x45   :  { %1017 = vmatpush1.bf16.xpose.msra.mxu0 %v2321_v10  ;;  %1058 = vmatpush1.bf16.xpose.msra.mxu1 %v2322_v11  ;;  %v2381_v54 = vld [vmem:[#allocation7 + $0x160] ss:$16 sps:$4 sm:$0xff]   ;;  %v2382_v55 = vld [vmem:[#allocation7 + $0x168] ss:$16 sps:$4 sm:$0xff]   ;;  %v2383_v56 = vld [vmem:[#allocation7 + $0x144] ss:$16 sps:$4 sm:$0xff]  }
  0x46   :  { %1018 = vmatprep.subr.bf16.mxu0 %v2323_v12  ;;  %1059 = vmatprep.subr.bf16.mxu1 %v2325_v13  ;;  %v2385_v57 = vld [vmem:[#allocation7 + $0x14c] ss:$16 sps:$4 sm:$0xff]   ;;  %v2387_v58 = vld [vmem:[#allocation7 + $0x140] ss:$16 sps:$4 sm:$0xff]   ;;  %v2388_v59 = vld [vmem:[#allocation7 + $0x148] ss:$16 sps:$4 sm:$0xff]  }
  0x47   :  { %v2389_v60 = vld [vmem:[#allocation7 + $0x124] ss:$16 sps:$4 sm:$0xff]   ;;  %v2391_v61 = vld [vmem:[#allocation7 + $0x12c] ss:$16 sps:$4 sm:$0xff]   ;;  %v2393_v62 = vld [vmem:[#allocation7 + $0x120] ss:$16 sps:$4 sm:$0xff]  }
  0x48   :  { %v2394_v63 = vld [vmem:[#allocation7 + $0x128] ss:$16 sps:$4 sm:$0xff]   ;;  %v2395_v0 = vld [vmem:[#allocation7 + $0x104] ss:$16 sps:$4 sm:$0xff]   ;;  %v2397_v1 = vld [vmem:[#allocation7 + $0x10c] ss:$16 sps:$4 sm:$0xff]  }
  0x49   :  { %v2399_v2 = vld [vmem:[#allocation7 + $0x100] ss:$16 sps:$4 sm:$0xff]   ;;  %v2400_v3 = vld [vmem:[#allocation7 + $0x108] ss:$16 sps:$4 sm:$0xff]   ;;  %v2407_v4 = vld [vmem:[#allocation7 + $0x2e4] ss:$16 sps:$4 sm:$0xff]  }
  0x4a   :  { %v2410_v5 = vld [vmem:[#allocation7 + $0x2ec] ss:$16 sps:$4 sm:$0xff]   ;;  %v2405_v6 = vld [vmem:[#allocation7 + $0x2e0] ss:$16 sps:$4 sm:$0xff]   ;;  %v2408_v9 = vld [vmem:[#allocation7 + $0x2e8] ss:$16 sps:$4 sm:$0xff]  }
  0x4b   :  { %v2413_v10 = vld [vmem:[#allocation7 + $0x2c4] ss:$16 sps:$4 sm:$0xff]   ;;  %v2416_v11 = vld [vmem:[#allocation7 + $0x2cc] ss:$16 sps:$4 sm:$0xff]   ;;  %v2411_v12 = vld [vmem:[#allocation7 + $0x2c0] ss:$16 sps:$4 sm:$0xff]  }
  0x4c   :  { %v2414_v13 = vld [vmem:[#allocation7 + $0x2c8] ss:$16 sps:$4 sm:$0xff]   ;;  %v2437_v26 = vld [vmem:[#allocation7 + $0x244] ss:$16 sps:$4 sm:$0xff]   ;;  %v2435_v28 = vld [vmem:[#allocation7 + $0x240] ss:$16 sps:$4 sm:$0xff]  }
  0x4d   :  { %1019 = vmatpush1.bf16.xpose.msra.mxu0 %v2327_v14  ;;  %1060 = vmatpush1.bf16.xpose.msra.mxu1 %v2328_v15  ;;  %v2419_v14 = vld [vmem:[#allocation7 + $0x2a4] ss:$16 sps:$4 sm:$0xff]   ;;  %v2422_v15 = vld [vmem:[#allocation7 + $0x2ac] ss:$16 sps:$4 sm:$0xff]  }
  0x4e   :  { %1020 = vmatprep.subr.bf16.mxu0 %v2329_v16  ;;  %1061 = vmatprep.subr.bf16.mxu1 %v2331_v17  ;;  %v2417_v16 = vld [vmem:[#allocation7 + $0x2a0] ss:$16 sps:$4 sm:$0xff]   ;;  %v2420_v17 = vld [vmem:[#allocation7 + $0x2a8] ss:$16 sps:$4 sm:$0xff]  }
  0x55   :  { %1021 = vmatpush1.bf16.xpose.msra.mxu0 %v2333_v18  ;;  %1062 = vmatpush1.bf16.xpose.msra.mxu1 %v2334_v19  ;;  %v2425_v18 = vld [vmem:[#allocation7 + $0x284] ss:$16 sps:$4 sm:$0xff]   ;;  %v2428_v19 = vld [vmem:[#allocation7 + $0x28c] ss:$16 sps:$4 sm:$0xff]  }
  0x56   :  { %1022 = vmatprep.subr.bf16.mxu0 %v2335_v20  ;;  %1063 = vmatprep.subr.bf16.mxu1 %v2337_v21  ;;  %v2423_v20 = vld [vmem:[#allocation7 + $0x280] ss:$16 sps:$4 sm:$0xff]   ;;  %v2426_v21 = vld [vmem:[#allocation7 + $0x288] ss:$16 sps:$4 sm:$0xff]  }
  0x5d   :  { %1023 = vmatpush1.bf16.xpose.msra.mxu0 %v2339_v22  ;;  %1064 = vmatpush1.bf16.xpose.msra.mxu1 %v2340_v23  ;;  %v2431_v22 = vld [vmem:[#allocation7 + $0x264] ss:$16 sps:$4 sm:$0xff]   ;;  %v2434_v23 = vld [vmem:[#allocation7 + $0x26c] ss:$16 sps:$4 sm:$0xff]  }
  0x5e   :  { %1024 = vmatprep.subr.bf16.mxu0 %v2341_v24  ;;  %1065 = vmatprep.subr.bf16.mxu1 %v2343_v25  ;;  %v2429_v24 = vld [vmem:[#allocation7 + $0x260] ss:$16 sps:$4 sm:$0xff]   ;;  %v2432_v25 = vld [vmem:[#allocation7 + $0x268] ss:$16 sps:$4 sm:$0xff]  }
  0x65   :  { %1025 = vmatpush1.bf16.xpose.msra.mxu0 %v2345_v30  ;;  %1066 = vmatpush1.bf16.xpose.msra.mxu1 %v2346_v31  ;;  %v2443_v30 = vld [vmem:[#allocation7 + $0x224] ss:$16 sps:$4 sm:$0xff]   ;;  %v2446_v31 = vld [vmem:[#allocation7 + $0x22c] ss:$16 sps:$4 sm:$0xff]  }
  0x66   :  { %1026 = vmatprep.subr.bf16.mxu0 %v2347_v32  ;;  %1067 = vmatprep.subr.bf16.mxu1 %v2349_v33  ;;  %v2441_v32 = vld [vmem:[#allocation7 + $0x220] ss:$16 sps:$4 sm:$0xff]   ;;  %v2444_v33 = vld [vmem:[#allocation7 + $0x228] ss:$16 sps:$4 sm:$0xff]  }
  0x6d   :  { %1027 = vmatpush1.bf16.xpose.msra.mxu0 %v2351_v34  ;;  %1068 = vmatpush1.bf16.xpose.msra.mxu1 %v2352_v35  ;;  %v2449_v34 = vld [vmem:[#allocation7 + $0x204] ss:$16 sps:$4 sm:$0xff]   ;;  %v2452_v35 = vld [vmem:[#allocation7 + $0x20c] ss:$16 sps:$4 sm:$0xff]  }
  0x6e   :  { %1028 = vmatprep.subr.bf16.mxu0 %v2353_v36  ;;  %1069 = vmatprep.subr.bf16.mxu1 %v2355_v37  ;;  %v2447_v36 = vld [vmem:[#allocation7 + $0x200] ss:$16 sps:$4 sm:$0xff]   ;;  %v2450_v37 = vld [vmem:[#allocation7 + $0x208] ss:$16 sps:$4 sm:$0xff]  }
  0x75   :  { %1029 = vmatpush2.bf16.xpose.msra.mxu0 %v2357_v38  ;;  %1070 = vmatpush2.bf16.xpose.msra.mxu1 %v2358_v39  ;;  %v2455_v38 = vld [vmem:[#allocation7 + $0x3e4] ss:$16 sps:$4 sm:$0xff]   ;;  %v2458_v39 = vld [vmem:[#allocation7 + $0x3ec] ss:$16 sps:$4 sm:$0xff]  }
  0x76   :  { %1030 = vmatprep.subr.bf16.mxu0 %v2359_v40  ;;  %1071 = vmatprep.subr.bf16.mxu1 %v2361_v41  ;;  %v2453_v40 = vld [vmem:[#allocation7 + $0x3e0] ss:$16 sps:$4 sm:$0xff]   ;;  %v2456_v41 = vld [vmem:[#allocation7 + $0x3e8] ss:$16 sps:$4 sm:$0xff]  }
  0x7d   :  { %1031 = vmatpush2.bf16.xpose.msra.mxu0 %v2363_v42  ;;  %1072 = vmatpush2.bf16.xpose.msra.mxu1 %v2364_v43  ;;  %v2461_v42 = vld [vmem:[#allocation7 + $0x3c4] ss:$16 sps:$4 sm:$0xff]   ;;  %v2464_v43 = vld [vmem:[#allocation7 + $0x3cc] ss:$16 sps:$4 sm:$0xff]  }
  0x7e   :  { %1032 = vmatprep.subr.bf16.mxu0 %v2365_v44  ;;  %1073 = vmatprep.subr.bf16.mxu1 %v2367_v45  ;;  %v2459_v44 = vld [vmem:[#allocation7 + $0x3c0] ss:$16 sps:$4 sm:$0xff]   ;;  %v2462_v45 = vld [vmem:[#allocation7 + $0x3c8] ss:$16 sps:$4 sm:$0xff]  }
  0x85   :  { %1033 = vmatpush2.bf16.xpose.msra.mxu0 %v2369_v46  ;;  %1074 = vmatpush2.bf16.xpose.msra.mxu1 %v2370_v47  ;;  %v2467_v46 = vld [vmem:[#allocation7 + $0x3a4] ss:$16 sps:$4 sm:$0xff]   ;;  %v2470_v47 = vld [vmem:[#allocation7 + $0x3ac] ss:$16 sps:$4 sm:$0xff]  }
  0x86   :  { %1034 = vmatprep.subr.bf16.mxu0 %v2371_v48  ;;  %1075 = vmatprep.subr.bf16.mxu1 %v2373_v49  ;;  %v2465_v48 = vld [vmem:[#allocation7 + $0x3a0] ss:$16 sps:$4 sm:$0xff]   ;;  %v2468_v49 = vld [vmem:[#allocation7 + $0x3a8] ss:$16 sps:$4 sm:$0xff]  }
  0x8d   :  { %1035 = vmatpush2.bf16.xpose.msra.mxu0 %v2375_v50  ;;  %1076 = vmatpush2.bf16.xpose.msra.mxu1 %v2376_v51  ;;  %v2473_v50 = vld [vmem:[#allocation7 + $0x384] ss:$16 sps:$4 sm:$0xff]   ;;  %v2476_v51 = vld [vmem:[#allocation7 + $0x38c] ss:$16 sps:$4 sm:$0xff]  }
  0x8e   :  { %1036 = vmatprep.subr.bf16.mxu0 %v2377_v52  ;;  %1077 = vmatprep.subr.bf16.mxu1 %v2379_v53  ;;  %v2471_v52 = vld [vmem:[#allocation7 + $0x380] ss:$16 sps:$4 sm:$0xff]   ;;  %v2474_v53 = vld [vmem:[#allocation7 + $0x388] ss:$16 sps:$4 sm:$0xff]  }
  0x95   :  { %1037 = vmatpush2.bf16.xpose.msra.mxu0 %v2381_v54  ;;  %1078 = vmatpush2.bf16.xpose.msra.mxu1 %v2382_v55  ;;  %v2479_v54 = vld [vmem:[#allocation7 + $0x364] ss:$16 sps:$4 sm:$0xff]   ;;  %v2482_v55 = vld [vmem:[#allocation7 + $0x36c] ss:$16 sps:$4 sm:$0xff]  }
  0x96   :  { %1038 = vmatprep.subr.bf16.mxu0 %v2383_v56  ;;  %1079 = vmatprep.subr.bf16.mxu1 %v2385_v57  ;;  %v2477_v56 = vld [vmem:[#allocation7 + $0x360] ss:$16 sps:$4 sm:$0xff]   ;;  %v2480_v57 = vld [vmem:[#allocation7 + $0x368] ss:$16 sps:$4 sm:$0xff]  }
  0x9d   :  { %1039 = vmatpush2.bf16.xpose.msra.mxu0 %v2387_v58  ;;  %1080 = vmatpush2.bf16.xpose.msra.mxu1 %v2388_v59  ;;  %v2485_v58 = vld [vmem:[#allocation7 + $0x344] ss:$16 sps:$4 sm:$0xff]   ;;  %v2488_v59 = vld [vmem:[#allocation7 + $0x34c] ss:$16 sps:$4 sm:$0xff]  }
  0x9e   :  { %1040 = vmatprep.subr.bf16.mxu0 %v2389_v60  ;;  %1081 = vmatprep.subr.bf16.mxu1 %v2391_v61  ;;  %v2483_v60 = vld [vmem:[#allocation7 + $0x340] ss:$16 sps:$4 sm:$0xff]   ;;  %v2486_v61 = vld [vmem:[#allocation7 + $0x348] ss:$16 sps:$4 sm:$0xff]  }
  0xa5   :  { %1041 = vmatpush2.bf16.xpose.msra.mxu0 %v2393_v62  ;;  %1082 = vmatpush2.bf16.xpose.msra.mxu1 %v2394_v63  ;;  %v2491_v62 = vld [vmem:[#allocation7 + $0x324] ss:$16 sps:$4 sm:$0xff]   ;;  %v2494_v63 = vld [vmem:[#allocation7 + $0x32c] ss:$16 sps:$4 sm:$0xff]  }
  0xa6   :  { %1042 = vmatprep.subr.bf16.mxu0 %v2395_v0  ;;  %1083 = vmatprep.subr.bf16.mxu1 %v2397_v1  ;;  %v2489_v0 = vld [vmem:[#allocation7 + $0x320] ss:$16 sps:$4 sm:$0xff]   ;;  %v2492_v1 = vld [vmem:[#allocation7 + $0x328] ss:$16 sps:$4 sm:$0xff]  }
  0xad   :  { %1043 = vmatpush2.bf16.xpose.msra.mxu0 %v2399_v2  ;;  %1084 = vmatpush2.bf16.xpose.msra.mxu1 %v2400_v3  ;;  %v2497_v2 = vld [vmem:[#allocation7 + $0x304] ss:$16 sps:$4 sm:$0xff]   ;;  %v2500_v3 = vld [vmem:[#allocation7 + $0x30c] ss:$16 sps:$4 sm:$0xff]  }
  0xae   :  { %1094 = vmatprep.subr.bf16.mxu0 %v2407_v4  ;;  %1135 = vmatprep.subr.bf16.mxu1 %v2410_v5  ;;  %v2495_v4 = vld [vmem:[#allocation7 + $0x300] ss:$16 sps:$4 sm:$0xff]   ;;  %v2498_v5 = vld [vmem:[#allocation7 + $0x308] ss:$16 sps:$4 sm:$0xff]  }
  0xb4   :  { %1045 = vmatmul.mubr.bf16.vlgmr.msra.gmra.mxu0 %v2871_v7  ;;  %1086 = vmatmul.mubr.bf16.vlgmr.msra.gmra.mxu1 %v2875_v8 }
  0xb5   :  { %1095 = vmatpush1.bf16.xpose.msra.mxu0 %v2405_v6  ;;  %1136 = vmatpush1.bf16.xpose.msra.mxu1 %v2408_v9  ;;  %v2503_v6 = vld [vmem:[#allocation8 + $0xe4] ss:$16 sps:$4 sm:$0xff]   ;;  %v2533_v9 = vld [vmem:[#allocation8 + $0xec] ss:$16 sps:$4 sm:$0xff]  }
  0xb6   :  { %1096 = vmatprep.subr.bf16.mxu0 %v2413_v10  ;;  %1137 = vmatprep.subr.bf16.mxu1 %v2416_v11  ;;  %v2501_v10 = vld [vmem:[#allocation8 + $0xe0] ss:$16 sps:$4 sm:$0xff]   ;;  %v2531_v11 = vld [vmem:[#allocation8 + $0xe8] ss:$16 sps:$4 sm:$0xff]  }
  0xb7   :  { %1126 = vmatprep.mubr.bf16.mxu0 %v2859_v27  ;;  %1167 = vmatprep.mubr.bf16.mxu1 %v2865_v29  ;;  %v2440_v27 = vld [vmem:[#allocation7 + $0x24c] ss:$16 sps:$4 sm:$0xff]   ;;  %v2438_v29 = vld [vmem:[#allocation7 + $0x248] ss:$16 sps:$4 sm:$0xff]  }
  0xbd   :  { %1097 = vmatpush1.bf16.xpose.msra.mxu0 %v2411_v12  ;;  %1138 = vmatpush1.bf16.xpose.msra.mxu1 %v2414_v13  ;;  %v2506_v12 = vld [vmem:[#allocation8 + $0xc4] ss:$16 sps:$4 sm:$0xff]   ;;  %v2539_v13 = vld [vmem:[#allocation8 + $0xcc] ss:$16 sps:$4 sm:$0xff]  }
  0xbe   :  { %1098 = vmatprep.subr.bf16.mxu0 %v2419_v14  ;;  %1139 = vmatprep.subr.bf16.mxu1 %v2422_v15  ;;  %v2504_v14 = vld [vmem:[#allocation8 + $0xc0] ss:$16 sps:$4 sm:$0xff]   ;;  %v2537_v15 = vld [vmem:[#allocation8 + $0xc8] ss:$16 sps:$4 sm:$0xff]  }
  0xc5   :  { %1099 = vmatpush1.bf16.xpose.msra.mxu0 %v2417_v16  ;;  %1140 = vmatpush1.bf16.xpose.msra.mxu1 %v2420_v17  ;;  %v2509_v16 = vld [vmem:[#allocation8 + $0xa4] ss:$16 sps:$4 sm:$0xff]   ;;  %v2545_v17 = vld [vmem:[#allocation8 + $0xac] ss:$16 sps:$4 sm:$0xff]  }
  0xc6   :  { %1100 = vmatprep.subr.bf16.mxu0 %v2425_v18  ;;  %1141 = vmatprep.subr.bf16.mxu1 %v2428_v19  ;;  %v2507_v18 = vld [vmem:[#allocation8 + $0xa0] ss:$16 sps:$4 sm:$0xff]   ;;  %v2543_v19 = vld [vmem:[#allocation8 + $0xa8] ss:$16 sps:$4 sm:$0xff]  }
  0xcd   :  { %1101 = vmatpush1.bf16.xpose.msra.mxu0 %v2423_v20  ;;  %1142 = vmatpush1.bf16.xpose.msra.mxu1 %v2426_v21  ;;  %v2512_v20 = vld [vmem:[#allocation8 + $0x84] ss:$16 sps:$4 sm:$0xff]   ;;  %v2551_v21 = vld [vmem:[#allocation8 + $0x8c] ss:$16 sps:$4 sm:$0xff]  }
  0xce   :  { %1102 = vmatprep.subr.bf16.mxu0 %v2431_v22  ;;  %1143 = vmatprep.subr.bf16.mxu1 %v2434_v23  ;;  %v2515_v22 = vld [vmem:[#allocation8 + $0x64] ss:$16 sps:$4 sm:$0xff]   ;;  %v2557_v23 = vld [vmem:[#allocation8 + $0x6c] ss:$16 sps:$4 sm:$0xff]  }
  0xd5   :  { %1103 = vmatpush1.bf16.xpose.msra.mxu0 %v2429_v24  ;;  %1144 = vmatpush1.bf16.xpose.msra.mxu1 %v2432_v25  ;;  %v2513_v24 = vld [vmem:[#allocation8 + $0x60] ss:$16 sps:$4 sm:$0xff]   ;;  %v2555_v25 = vld [vmem:[#allocation8 + $0x68] ss:$16 sps:$4 sm:$0xff]  }
  0xd6   :  { %1104 = vmatprep.subr.bf16.mxu0 %v2437_v26  ;;  %1145 = vmatprep.subr.bf16.mxu1 %v2440_v27  ;;  %v2518_v26 = vld [vmem:[#allocation8 + $0x44] ss:$16 sps:$4 sm:$0xff]   ;;  %v2563_v27 = vld [vmem:[#allocation8 + $0x4c] ss:$16 sps:$4 sm:$0xff]  }
  0xdd   :  { %1105 = vmatpush1.bf16.xpose.msra.mxu0 %v2435_v28  ;;  %1146 = vmatpush1.bf16.xpose.msra.mxu1 %v2438_v29  ;;  %v2516_v28 = vld [vmem:[#allocation8 + $0x40] ss:$16 sps:$4 sm:$0xff]   ;;  %v2561_v29 = vld [vmem:[#allocation8 + $0x48] ss:$16 sps:$4 sm:$0xff]  }
  0xde   :  { %1106 = vmatprep.subr.bf16.mxu0 %v2443_v30  ;;  %1147 = vmatprep.subr.bf16.mxu1 %v2446_v31  ;;  %v2521_v30 = vld [vmem:[#allocation8 + $0x24] ss:$16 sps:$4 sm:$0xff]   ;;  %v2569_v31 = vld [vmem:[#allocation8 + $0x2c] ss:$16 sps:$4 sm:$0xff]  }
  0xe5   :  { %1107 = vmatpush1.bf16.xpose.msra.mxu0 %v2441_v32  ;;  %1148 = vmatpush1.bf16.xpose.msra.mxu1 %v2444_v33  ;;  %v2519_v32 = vld [vmem:[#allocation8 + $0x20] ss:$16 sps:$4 sm:$0xff]   ;;  %v2567_v33 = vld [vmem:[#allocation8 + $0x28] ss:$16 sps:$4 sm:$0xff]  }
  0xe6   :  { %1108 = vmatprep.subr.bf16.mxu0 %v2449_v34  ;;  %1149 = vmatprep.subr.bf16.mxu1 %v2452_v35  ;;  %v2524_v34 = vld [vmem:[#allocation8 + $0x4] ss:$16 sps:$4 sm:$0xff]   ;;  %v2575_v35 = vld [vmem:[#allocation8 + $0xc] ss:$16 sps:$4 sm:$0xff]  }
  0xed   :  { %1109 = vmatpush1.bf16.xpose.msra.mxu0 %v2447_v36  ;;  %1150 = vmatpush1.bf16.xpose.msra.mxu1 %v2450_v37  ;;  %v338_v36 = vlaneseq  ;;  %v2522_v37 = vld [vmem:[#allocation8] ss:$16 sps:$4 sm:$0xff]  }
  0xee   :  { %1110 = vmatprep.subr.bf16.mxu0 %v2455_v38  ;;  %1151 = vmatprep.subr.bf16.mxu1 %v2458_v39  ;;  %v2573_v38 = vld [vmem:[#allocation8 + $0x8] ss:$16 sps:$4 sm:$0xff]   ;;  %v2527_v39 = vld [vmem:[#allocation8 + $0x1e4] ss:$16 sps:$4 sm:$0xff]  }
  0xf5   :  { %1111 = vmatpush2.bf16.xpose.msra.mxu0 %v2453_v40  ;;  %1152 = vmatpush2.bf16.xpose.msra.mxu1 %v2456_v41  ;;  %v2581_v40 = vld [vmem:[#allocation8 + $0x1ec] ss:$16 sps:$4 sm:$0xff]   ;;  %v2883_v41 = vshrl.u32 %v338_v36, 7 }
  0xf6   :  { %1112 = vmatprep.subr.bf16.mxu0 %v2461_v42  ;;  %1153 = vmatprep.subr.bf16.mxu1 %v2464_v43  ;;  %v2889_v43 = vld [vmem:[%s2945_s3] sm:$0xf] }
  0xf7   :  { %v344_v42 = vsub.s32 1, %v2883_v41 }
  0xfd   :  { %1113 = vmatpush2.bf16.xpose.msra.mxu0 %v2459_v44  ;;  %1154 = vmatpush2.bf16.xpose.msra.mxu1 %v2462_v45  ;;  %v2891_v44 = vld [vmem:[#allocation5] sm:$0xff] }
  0xfe   :  { %1114 = vmatprep.subr.bf16.mxu0 %v2467_v46  ;;  %1155 = vmatprep.subr.bf16.mxu1 %v2470_v47  ;;  %v2525_v45 = vld [vmem:[#allocation8 + $0x1e0] ss:$16 sps:$4 sm:$0xff]   ;;  %v2579_v46 = vld [vmem:[#allocation8 + $0x1e8] ss:$16 sps:$4 sm:$0xff]   ;;  %v2530_v47 = vld [vmem:[#allocation8 + $0x1c4] ss:$16 sps:$4 sm:$0xff]  }
 0x105   :  { %1115 = vmatpush2.bf16.xpose.msra.mxu0 %v2465_v48  ;;  %1156 = vmatpush2.bf16.xpose.msra.mxu1 %v2468_v49  ;;  %v2587_v48 = vld [vmem:[#allocation8 + $0x1cc] ss:$16 sps:$4 sm:$0xff]   ;;  %v345_v49 = vrot.slane %v2889_v43, %v344_v42 }
 0x106   :  { %1116 = vmatprep.subr.bf16.mxu0 %v2473_v50  ;;  %1157 = vmatprep.subr.bf16.mxu1 %v2476_v51  ;;  %v1177_v50 = vunpack.c.h.bf16 %v2891_v44 }
 0x10d   :  { %1117 = vmatpush2.bf16.xpose.msra.mxu0 %v2471_v52  ;;  %1158 = vmatpush2.bf16.xpose.msra.mxu1 %v2474_v53 }
 0x10e   :  { %1118 = vmatprep.subr.bf16.mxu0 %v2479_v54  ;;  %1159 = vmatprep.subr.bf16.mxu1 %v2482_v55 }
 0x115   :  { %1119 = vmatpush2.bf16.xpose.msra.mxu0 %v2477_v56  ;;  %1160 = vmatpush2.bf16.xpose.msra.mxu1 %v2480_v57  ;;  %v1181_v56 = vmul.f32 1.3333334, %v1177_v50  ;;  %v2608_v50 = vld [vmem:[#allocation8 + $0x224] ss:$16 sps:$4 sm:$0xff]  }
 0x116   :  { %1120 = vmatprep.subr.bf16.mxu0 %v2485_v58  ;;  %1161 = vmatprep.subr.bf16.mxu1 %v2488_v59 }
 0x11d   :  { %1121 = vmatpush2.bf16.xpose.msra.mxu0 %v2483_v60  ;;  %1162 = vmatpush2.bf16.xpose.msra.mxu1 %v2486_v61  ;;  %v2528_v60 = vld [vmem:[#allocation8 + $0x1c0] ss:$16 sps:$4 sm:$0xff]   ;;  %v2585_v61 = vld [vmem:[#allocation8 + $0x1c8] ss:$16 sps:$4 sm:$0xff]  }
 0x11e   :  { %1122 = vmatprep.subr.bf16.mxu0 %v2491_v62  ;;  %1163 = vmatprep.subr.bf16.mxu1 %v2494_v63 }
 0x125   :  { %1123 = vmatpush2.bf16.xpose.msra.mxu0 %v2489_v0  ;;  %1164 = vmatpush2.bf16.xpose.msra.mxu1 %v2492_v1  ;;  %v2536_v0 = vld [vmem:[#allocation8 + $0x1a4] ss:$16 sps:$4 sm:$0xff]   ;;  %v2593_v1 = vld [vmem:[#allocation8 + $0x1ac] ss:$16 sps:$4 sm:$0xff]  }
 0x126   :  { %1124 = vmatprep.subr.bf16.mxu0 %v2497_v2  ;;  %1165 = vmatprep.subr.bf16.mxu1 %v2500_v3 }
 0x12d   :  { %1125 = vmatpush2.bf16.xpose.msra.mxu0 %v2495_v4  ;;  %1166 = vmatpush2.bf16.xpose.msra.mxu1 %v2498_v5  ;;  %v2534_v4 = vld [vmem:[#allocation8 + $0x1a0] ss:$16 sps:$4 sm:$0xff]   ;;  %v2591_v5 = vld [vmem:[#allocation8 + $0x1a8] ss:$16 sps:$4 sm:$0xff]  }
 0x12e   :  { %1853 = vmatprep.subr.bf16.mxu0 %v2503_v6  ;;  %1894 = vmatprep.subr.bf16.mxu1 %v2533_v9  ;;  %v2542_v6 = vld [vmem:[#allocation8 + $0x184] ss:$16 sps:$4 sm:$0xff]   ;;  %v2599_v9 = vld [vmem:[#allocation8 + $0x18c] ss:$16 sps:$4 sm:$0xff]  }
 0x134   :  { %1127 = vmatmul.mubr.bf16.vlgmr.msra.gmra.mxu0 %v2871_v7  ;;  %1168 = vmatmul.mubr.bf16.vlgmr.msra.gmra.mxu1 %v2875_v8  ;;  %v2510_v7 = vld [vmem:[#allocation8 + $0x80] ss:$16 sps:$4 sm:$0xff]   ;;  %v2549_v8 = vld [vmem:[#allocation8 + $0x88] ss:$16 sps:$4 sm:$0xff]  }
 0x135   :  { %1854 = vmatpush1.bf16.xpose.msra.mxu0 %v2501_v10  ;;  %1895 = vmatpush1.bf16.xpose.msra.mxu1 %v2531_v11  ;;  %v2540_v10 = vld [vmem:[#allocation8 + $0x180] ss:$16 sps:$4 sm:$0xff]   ;;  %v2597_v11 = vld [vmem:[#allocation8 + $0x188] ss:$16 sps:$4 sm:$0xff]  }
 0x136   :  { %1855 = vmatprep.subr.bf16.mxu0 %v2506_v12  ;;  %1896 = vmatprep.subr.bf16.mxu1 %v2539_v13  ;;  %v2548_v12 = vld [vmem:[#allocation8 + $0x164] ss:$16 sps:$4 sm:$0xff]   ;;  %v2605_v13 = vld [vmem:[#allocation8 + $0x16c] ss:$16 sps:$4 sm:$0xff]  }
 0x13d   :  { %1856 = vmatpush1.bf16.xpose.msra.mxu0 %v2504_v14  ;;  %1897 = vmatpush1.bf16.xpose.msra.mxu1 %v2537_v15  ;;  %v2546_v14 = vld [vmem:[#allocation8 + $0x160] ss:$16 sps:$4 sm:$0xff]   ;;  %v2603_v15 = vld [vmem:[#allocation8 + $0x168] ss:$16 sps:$4 sm:$0xff]  }
 0x13e   :  { %1857 = vmatprep.subr.bf16.mxu0 %v2509_v16  ;;  %1898 = vmatprep.subr.bf16.mxu1 %v2545_v17  ;;  %v2554_v16 = vld [vmem:[#allocation8 + $0x144] ss:$16 sps:$4 sm:$0xff]   ;;  %v2611_v17 = vld [vmem:[#allocation8 + $0x14c] ss:$16 sps:$4 sm:$0xff]  }
 0x145   :  { %1858 = vmatpush1.bf16.xpose.msra.mxu0 %v2507_v18  ;;  %1899 = vmatpush1.bf16.xpose.msra.mxu1 %v2543_v19  ;;  %v2552_v18 = vld [vmem:[#allocation8 + $0x140] ss:$16 sps:$4 sm:$0xff]   ;;  %v2609_v19 = vld [vmem:[#allocation8 + $0x148] ss:$16 sps:$4 sm:$0xff]  }
 0x146   :  { %1859 = vmatprep.subr.bf16.mxu0 %v2512_v20  ;;  %1900 = vmatprep.subr.bf16.mxu1 %v2551_v21  ;;  %v2560_v20 = vld [vmem:[#allocation8 + $0x124] ss:$16 sps:$4 sm:$0xff]   ;;  %v2617_v21 = vld [vmem:[#allocation8 + $0x12c] ss:$16 sps:$4 sm:$0xff]  }
 0x14d   :  { %1860 = vmatpush1.bf16.xpose.msra.mxu0 %v2510_v7  ;;  %1901 = vmatpush1.bf16.xpose.msra.mxu1 %v2549_v8  ;;  %v340_v7 = vsub.s32 0, %v2883_v41  ;;  %v2558_v8 = vld [vmem:[#allocation8 + $0x120] ss:$16 sps:$4 sm:$0xff]  }
 0x14e   :  { %1861 = vmatprep.subr.bf16.mxu0 %v2515_v22  ;;  %1902 = vmatprep.subr.bf16.mxu1 %v2557_v23  ;;  %v2615_v22 = vld [vmem:[#allocation8 + $0x128] ss:$16 sps:$4 sm:$0xff]  }
 0x14f   :  { %v341_v23 = vrot.slane %v2889_v43, %v340_v7 }
 0x155   :  { %1862 = vmatpush1.bf16.xpose.msra.mxu0 %v2513_v24  ;;  %1903 = vmatpush1.bf16.xpose.msra.mxu1 %v2555_v25  ;;  %v2566_v24 = vld [vmem:[#allocation8 + $0x104] ss:$16 sps:$4 sm:$0xff]   ;;  %v2623_v25 = vld [vmem:[#allocation8 + $0x10c] ss:$16 sps:$4 sm:$0xff]  }
 0x156   :  { %1863 = vmatprep.subr.bf16.mxu0 %v2518_v26  ;;  %1904 = vmatprep.subr.bf16.mxu1 %v2563_v27  ;;  %v1176_v27 = vunpack.c.l.bf16 %v2891_v44  ;;  %v2590_v44 = vld [vmem:[#allocation8 + $0x284] ss:$16 sps:$4 sm:$0xff]  }
 0x15d   :  { %1864 = vmatpush1.bf16.xpose.msra.mxu0 %v2516_v28  ;;  %1905 = vmatpush1.bf16.xpose.msra.mxu1 %v2561_v29  ;;  %v2564_v28 = vld [vmem:[#allocation8 + $0x100] ss:$16 sps:$4 sm:$0xff]   ;;  %v2621_v29 = vld [vmem:[#allocation8 + $0x108] ss:$16 sps:$4 sm:$0xff]  }
 0x15e   :  { %1865 = vmatprep.subr.bf16.mxu0 %v2521_v30  ;;  %1906 = vmatprep.subr.bf16.mxu1 %v2569_v31  ;;  %v1180_v31 = vmul.f32 1.3333334, %v1176_v27  ;;  %v2644_v27 = vld [vmem:[#allocation8 + $0x364] ss:$16 sps:$4 sm:$0xff]  }
 0x165   :  { %1866 = vmatpush1.bf16.xpose.msra.mxu0 %v2519_v32  ;;  %1907 = vmatpush1.bf16.xpose.msra.mxu1 %v2567_v33  ;;  %v2572_v32 = vld [vmem:[#allocation8 + $0x2e4] ss:$16 sps:$4 sm:$0xff]   ;;  %v2629_v33 = vld [vmem:[#allocation8 + $0x2ec] ss:$16 sps:$4 sm:$0xff]  }
 0x166   :  { %1867 = vmatprep.subr.bf16.mxu0 %v2524_v34  ;;  %1908 = vmatprep.subr.bf16.mxu1 %v2575_v35  ;;  %v2570_v35 = vld [vmem:[#allocation8 + $0x2e0] ss:$16 sps:$4 sm:$0xff]  }
 0x16d   :  { %1868 = vmatpush1.bf16.xpose.msra.mxu0 %v2522_v37  ;;  %1909 = vmatpush1.bf16.xpose.msra.mxu1 %v2573_v38  ;;  %v2578_v37 = vld [vmem:[#allocation8 + $0x2c4] ss:$16 sps:$4 sm:$0xff]   ;;  %v2576_v38 = vld [vmem:[#allocation8 + $0x2c0] ss:$16 sps:$4 sm:$0xff]  }
 0x16e   :  { %1869 = vmatprep.subr.bf16.mxu0 %v2527_v39  ;;  %1910 = vmatprep.subr.bf16.mxu1 %v2581_v40  ;;  %v2584_v39 = vld [vmem:[#allocation8 + $0x2a4] ss:$16 sps:$4 sm:$0xff]   ;;  %v2582_v40 = vld [vmem:[#allocation8 + $0x2a0] ss:$16 sps:$4 sm:$0xff]  }
 0x174   :  { %v2897_v51 = vpop.f32.mrf.mxu0  ;;  %v2899_v52 = vpop.f32.mrf.mxu1 }
 0x175   :  { %1870 = vmatpush2.bf16.xpose.msra.mxu0 %v2525_v45  ;;  %1911 = vmatpush2.bf16.xpose.msra.mxu1 %v2579_v46  ;;  %v1047_v26 = vadd.f32 %v2897_v51, %v341_v23  ;;  %v2588_v45 = vld [vmem:[#allocation8 + $0x280] ss:$16 sps:$4 sm:$0xff]   ;;  %v2596_v46 = vld [vmem:[#allocation8 + $0x264] ss:$16 sps:$4 sm:$0xff]  }
 0x176   :  { %v1048_v53 = vpop.f32.mrf.mxu0  ;;  %v1089_v54 = vpop.f32.mrf.mxu1  ;;  %1871 = vmatprep.subr.bf16.mxu0 %v2530_v47  ;;  %1912 = vmatprep.subr.bf16.mxu1 %v2587_v48  ;;  %v2594_v47 = vld [vmem:[#allocation8 + $0x260] ss:$16 sps:$4 sm:$0xff]   ;;  %v2602_v48 = vld [vmem:[#allocation8 + $0x244] ss:$16 sps:$4 sm:$0xff]  }
 0x177   :  { %v1049_v55 = vadd.f32 %v1048_v53, %v345_v49  ;;  %v1088_v30 = vadd.f32 %v2899_v52, %v1047_v26  ;;  %v2600_v49 = vld [vmem:[#allocation8 + $0x240] ss:$16 sps:$4 sm:$0xff]   ;;  %v2614_v52 = vld [vmem:[#allocation8 + $0x204] ss:$16 sps:$4 sm:$0xff]  }
 0x178   :  { %v1050_v57 = vpop.f32.mrf.mxu0  ;;  %v1091_v58 = vpop.f32.mrf.mxu1  ;;  %v2606_v51 = vld [vmem:[#allocation8 + $0x220] ss:$16 sps:$4 sm:$0xff]   ;;  %v2638_v23 = vld [vmem:[#allocation8 + $0x384] ss:$16 sps:$4 sm:$0xff]  }
 0x179   :  { %v1090_v59 = vadd.f32 %v1089_v54, %v1049_v55  ;;  %v1184_v34 = vmul.f32 %v1180_v31, %v1088_v30  ;;  %v2612_v53 = vld [vmem:[#allocation8 + $0x200] ss:$16 sps:$4 sm:$0xff]   ;;  %v2620_v54 = vld [vmem:[#allocation8 + $0x3e4] ss:$16 sps:$4 sm:$0xff]   ;;  %v348_v55 = vsub.s32 2, %v2883_v41  ;;  %v352_v57 = vsub.s32 3, %v2883_v41 }
 0x17a   :  { %v1051_v62 = vpop.f32.mrf.mxu0  ;;  %v1092_v63 = vpop.f32.mrf.mxu1  ;;  %v2636_v26 = vld [vmem:[#allocation8 + $0x380] ss:$16 sps:$4 sm:$0xff]   ;;  %v2650_v31 = vld [vmem:[#allocation8 + $0x344] ss:$16 sps:$4 sm:$0xff]  }
 0x17b   :  { %v1185_v2 = vmul.f32 %v1181_v56, %v1090_v59  ;;  %v2911_v36 = vpack.c.bf16 %v1184_v34, %v1184_v34  ;;  %v336_v56 = vld [vmem:[#allocation5 + $0x8] sm:$0xff]  ;;  %v349_v58 = vrot.slane %v2889_v43, %v348_v55  ;;  %v2618_v59 = vld [vmem:[#allocation8 + $0x3e0] ss:$16 sps:$4 sm:$0xff]   ;;  %v353_v62 = vrot.slane %v2889_v43, %v352_v57  ;;  %v2632_v43 = vld [vmem:[#allocation8 + $0x3a4] ss:$16 sps:$4 sm:$0xff]  }
 0x17c   :  { %v1179_v63 = vunpack.c.h.bf16 %v336_v56  ;;  %v2642_v30 = vld [vmem:[#allocation8 + $0x360] ss:$16 sps:$4 sm:$0xff]  }
 0x17d   :  { %v2901_v3 = vpack.c.bf16 %v1185_v2, %v1185_v2  ;;  %1872 = vmatpush2.bf16.xpose.msra.mxu0 %v2528_v60  ;;  %1913 = vmatpush2.bf16.xpose.msra.mxu1 %v2585_v61  ;;  %v1178_v60 = vunpack.c.l.bf16 %v336_v56  ;;  %v2626_v61 = vld [vmem:[#allocation8 + $0x3c4] ss:$16 sps:$4 sm:$0xff]   ;;  %v2648_v34 = vld [vmem:[#allocation8 + $0x340] ss:$16 sps:$4 sm:$0xff]   ;;  %v2675_v56 = vld [vmem:[#allocation8 + $0x3a8] ss:$16 sps:$4 sm:$0xff]  }
 0x17e   :  { %1873 = vmatprep.subr.bf16.mxu0 %v2536_v0  ;;  %1914 = vmatprep.subr.bf16.mxu1 %v2593_v1 }
 0x17f   :  { %1885 = vmatprep.mubr.bf16.mxu0 %v2901_v3 }
 0x185   :  { %1874 = vmatpush2.bf16.xpose.msra.mxu0 %v2534_v4  ;;  %1915 = vmatpush2.bf16.xpose.msra.mxu1 %v2591_v5 }
 0x186   :  { %1875 = vmatprep.subr.bf16.mxu0 %v2542_v6  ;;  %1916 = vmatprep.subr.bf16.mxu1 %v2599_v9 }
 0x18d   :  { %1876 = vmatpush2.bf16.xpose.msra.mxu0 %v2540_v10  ;;  %1917 = vmatpush2.bf16.xpose.msra.mxu1 %v2597_v11  ;;  %v1183_v10 = vmul.f32 1.3333334, %v1179_v63  ;;  %v2689_v63 = vld [vmem:[#allocation8 + $0x32c] ss:$16 sps:$4 sm:$0xff]  }
 0x18e   :  { %1877 = vmatprep.subr.bf16.mxu0 %v2548_v12  ;;  %1918 = vmatprep.subr.bf16.mxu1 %v2605_v13 }
 0x195   :  { %1878 = vmatpush2.bf16.xpose.msra.mxu0 %v2546_v14  ;;  %1919 = vmatpush2.bf16.xpose.msra.mxu1 %v2603_v15  ;;  %v2624_v14 = vld [vmem:[#allocation8 + $0x3c0] ss:$16 sps:$4 sm:$0xff]  }
 0x196   :  { %1879 = vmatprep.subr.bf16.mxu0 %v2554_v16  ;;  %1920 = vmatprep.subr.bf16.mxu1 %v2611_v17 }
 0x19d   :  { %1880 = vmatpush2.bf16.xpose.msra.mxu0 %v2552_v18  ;;  %1921 = vmatpush2.bf16.xpose.msra.mxu1 %v2609_v19 }
 0x19e   :  { %1881 = vmatprep.subr.bf16.mxu0 %v2560_v20  ;;  %1922 = vmatprep.subr.bf16.mxu1 %v2617_v21  ;;  %v2627_v20 = vld [vmem:[#allocation8 + $0x2e8] ss:$16 sps:$4 sm:$0xff]  }
 0x1a5   :  { %1882 = vmatpush2.bf16.xpose.msra.mxu0 %v2558_v8  ;;  %1923 = vmatpush2.bf16.xpose.msra.mxu1 %v2615_v22  ;;  %v2635_v8 = vld [vmem:[#allocation8 + $0x2cc] ss:$16 sps:$4 sm:$0xff]   ;;  %v2630_v22 = vld [vmem:[#allocation8 + $0x3a0] ss:$16 sps:$4 sm:$0xff]  }
 0x1a6   :  { %1883 = vmatprep.subr.bf16.mxu0 %v2566_v24  ;;  %1924 = vmatprep.subr.bf16.mxu1 %v2623_v25  ;;  %v2633_v24 = vld [vmem:[#allocation8 + $0x2c8] ss:$16 sps:$4 sm:$0xff]   ;;  %v2641_v25 = vld [vmem:[#allocation8 + $0x2ac] ss:$16 sps:$4 sm:$0xff]  }
 0x1ad   :  { %1884 = vmatpush2.bf16.xpose.msra.mxu0 %v2564_v28  ;;  %1925 = vmatpush2.bf16.xpose.msra.mxu1 %v2621_v29  ;;  %v2639_v28 = vld [vmem:[#allocation8 + $0x2a8] ss:$16 sps:$4 sm:$0xff]   ;;  %v2647_v29 = vld [vmem:[#allocation8 + $0x28c] ss:$16 sps:$4 sm:$0xff]  }
 0x1ae   :  { %1935 = vmatprep.subr.bf16.mxu0 %v2572_v32  ;;  %1976 = vmatprep.subr.bf16.mxu1 %v2629_v33  ;;  %v2645_v32 = vld [vmem:[#allocation8 + $0x288] ss:$16 sps:$4 sm:$0xff]   ;;  %v2653_v33 = vld [vmem:[#allocation8 + $0x26c] ss:$16 sps:$4 sm:$0xff]  }
 0x1b4   :  { %1886 = vmatmul.mubr.bf16.vlgmr.msra.gmra.mxu0 %v2911_v36 }
 0x1b5   :  { %1936 = vmatpush1.bf16.xpose.msra.mxu0 %v2570_v35  ;;  %1967 = vmatprep.mubr.bf16.mxu0 %v2901_v3  ;;  %v1182_v3 = vmul.f32 1.3333334, %v1178_v60  ;;  %v2656_v35 = vld [vmem:[#allocation8 + $0x324] ss:$16 sps:$4 sm:$0xff]   ;;  %v2683_v60 = vld [vmem:[#allocation8 + $0x36c] ss:$16 sps:$4 sm:$0xff]  }
 0x1b6   :  { %1937 = vmatprep.subr.bf16.mxu0 %v2578_v37  ;;  %v2651_v37 = vld [vmem:[#allocation8 + $0x268] ss:$16 sps:$4 sm:$0xff]  }
 0x1bd   :  { %1938 = vmatpush1.bf16.xpose.msra.mxu0 %v2576_v38  ;;  %v2659_v38 = vld [vmem:[#allocation8 + $0x24c] ss:$16 sps:$4 sm:$0xff]  }
 0x1be   :  { %1939 = vmatprep.subr.bf16.mxu0 %v2584_v39  ;;  %v2654_v39 = vld [vmem:[#allocation8 + $0x320] ss:$16 sps:$4 sm:$0xff]  }
 0x1c5   :  { %1940 = vmatpush1.bf16.xpose.msra.mxu0 %v2582_v40  ;;  %v2662_v40 = vld [vmem:[#allocation8 + $0x304] ss:$16 sps:$4 sm:$0xff]  }
 0x1c6   :  { %1941 = vmatprep.subr.bf16.mxu0 %v2590_v44  ;;  %v2657_v44 = vld [vmem:[#allocation8 + $0x248] ss:$16 sps:$4 sm:$0xff]  }
 0x1cd   :  { %1942 = vmatpush1.bf16.xpose.msra.mxu0 %v2588_v45  ;;  %v2665_v45 = vld [vmem:[#allocation8 + $0x22c] ss:$16 sps:$4 sm:$0xff]  }
 0x1ce   :  { %1943 = vmatprep.subr.bf16.mxu0 %v2596_v46  ;;  %v2660_v46 = vld [vmem:[#allocation8 + $0x300] ss:$16 sps:$4 sm:$0xff]  }
 0x1d5   :  { %1944 = vmatpush1.bf16.xpose.msra.mxu0 %v2594_v47  ;;  %v2663_v47 = vld [vmem:[#allocation8 + $0x228] ss:$16 sps:$4 sm:$0xff]  }
 0x1d6   :  { %1945 = vmatprep.subr.bf16.mxu0 %v2602_v48  ;;  %v2668_v48 = vld [vmem:[#allocation8 + $0x20c] ss:$16 sps:$4 sm:$0xff]  }
 0x1dd   :  { %1946 = vmatpush1.bf16.xpose.msra.mxu0 %v2600_v49  ;;  %v2666_v49 = vld [vmem:[#allocation8 + $0x208] ss:$16 sps:$4 sm:$0xff]  }
 0x1de   :  { %1947 = vmatprep.subr.bf16.mxu0 %v2608_v50  ;;  %v2671_v50 = vld [vmem:[#allocation8 + $0x3ec] ss:$16 sps:$4 sm:$0xff]  }
 0x1e5   :  { %1948 = vmatpush1.bf16.xpose.msra.mxu0 %v2606_v51  ;;  %v2669_v51 = vld [vmem:[#allocation8 + $0x3e8] ss:$16 sps:$4 sm:$0xff]  }
 0x1e6   :  { %1949 = vmatprep.subr.bf16.mxu0 %v2614_v52  ;;  %v2674_v52 = vld [vmem:[#allocation8 + $0x3cc] ss:$16 sps:$4 sm:$0xff]  }
 0x1ed   :  { %1950 = vmatpush1.bf16.xpose.msra.mxu0 %v2612_v53  ;;  %v2672_v53 = vld [vmem:[#allocation8 + $0x3c8] ss:$16 sps:$4 sm:$0xff]  }
 0x1ee   :  { %1951 = vmatprep.subr.bf16.mxu0 %v2620_v54  ;;  %v2677_v54 = vld [vmem:[#allocation8 + $0x3ac] ss:$16 sps:$4 sm:$0xff]  }
 0x1f4   :  { %v1128_v0 = vpop.f32.mrf.mxu0  ;;  %v1169_v1 = vpop.f32.mrf.mxu1 }
 0x1f5   :  { %v1129_v2 = vadd.f32 %v1128_v0, %v349_v58  ;;  %1952 = vmatpush2.bf16.xpose.msra.mxu0 %v2618_v59  ;;  %v2680_v58 = vld [vmem:[#allocation8 + $0x38c] ss:$16 sps:$4 sm:$0xff]   ;;  %v2678_v59 = vld [vmem:[#allocation8 + $0x388] ss:$16 sps:$4 sm:$0xff]  }
 0x1f6   :  { %v1130_v4 = vpop.f32.mrf.mxu0  ;;  %v1171_v5 = vpop.f32.mrf.mxu1  ;;  %1953 = vmatprep.subr.bf16.mxu0 %v2626_v61  ;;  %v2686_v61 = vld [vmem:[#allocation8 + $0x34c] ss:$16 sps:$4 sm:$0xff]   ;;  %v2687_v0 = vld [vmem:[#allocation8 + $0x328] ss:$16 sps:$4 sm:$0xff]  }
 0x1f7   :  { %v1170_v6 = vadd.f32 %v1169_v1, %v1129_v2  ;;  %v1131_v9 = vadd.f32 %v1130_v4, %v353_v62  ;;  %v2684_v62 = vld [vmem:[#allocation8 + $0x348] ss:$16 sps:$4 sm:$0xff]   ;;  %v2692_v1 = vld [vmem:[#allocation8 + $0x30c] ss:$16 sps:$4 sm:$0xff]  }
 0x1f8   :  { %v1132_v11 = vpop.f32.mrf.mxu0  ;;  %v1173_v12 = vpop.f32.mrf.mxu1 }
 0x1f9   :  { %v1172_v13 = vadd.f32 %v1171_v5, %v1131_v9  ;;  %v1186_v15 = vmul.f32 %v1182_v3, %v1170_v6  ;;  %v2690_v3 = vld [vmem:[#allocation8 + $0x308] ss:$16 sps:$4 sm:$0xff]   ;;  %v334_v9 = vld [vmem:[%s2947_s5] sm:$0xf]  ;;  %s2807_s5 = smov [#allocation10]  }
 0x1fa   :  { %v1133_v16 = vpop.f32.mrf.mxu0  ;;  %v1174_v17 = vpop.f32.mrf.mxu1  ;;  %v1200_v11 = vrot.slane %v334_v9, %v344_v42  ;;  %v1208_v42 = vrot.slane %v334_v9, %v352_v57  ;;  %s2027_s18 = sshll.u32 %s2807_s5, 4  ;;  %s2028_s18 = int_to_ptr.vmem [resolvable:$true] %s2027_s18 }
 0x1fb   :  { %v1187_v18 = vmul.f32 %v1183_v10, %v1172_v13  ;;  %v2923_v21 = vpack.c.bf16 %v1186_v15, %v1186_v15  ;;  %v1196_v10 = vrot.slane %v334_v9, %v340_v7  ;;  %v1204_v7 = vrot.slane %v334_v9, %v348_v55  ;;  %s2773_s19 = scalar_lea.vmem %s2028_s18, 512  ;;  %p2778_p7 = scmp.lt.s32.totalorder %s2028_s18, %s2028_s18 }
 0x1fc   :  { %p2774_p6 = scmp.ne.s32.totalorder %s2028_s18, %s2773_s19  ;;  %p2779_p8 = scmp.lt.s32.totalorder %s2773_s19, %s2773_s19 }
 0x1fd   :  { %v1191_v19 = vpack.c.bf16 %v1187_v18, %v1187_v18  ;;  %1954 = vmatpush2.bf16.xpose.msra.mxu0 %v2624_v14 }
 0x1fe   :  { %1955 = vmatprep.subr.bf16.mxu0 %v2632_v43  ;;  %p2780_p9 = por %p2779_p8, %p2778_p7 }
 0x1ff   :  { %1926 = vmatprep.mubr.bf16.mxu1 %v1191_v19 }
 0x200   :  { %1927 = vmatmul.mubr.bf16.vlgmr.msra.gmra.mxu1 %v2923_v21  ;;  %p2781_p10 = pnand %p2780_p9, %p2774_p6 }
 0x201   :  { %1977 = vmatpush1.bf16.xpose.msra.mxu1 %v2627_v20  ;;  %2008 = vmatprep.mubr.bf16.mxu1 %v1191_v19 }
 0x202   :  { %1978 = vmatprep.subr.bf16.mxu1 %v2635_v8 }
 0x205   :  { %1956 = vmatpush2.bf16.xpose.msra.mxu0 %v2630_v22 }
 0x206   :  { %1957 = vmatprep.subr.bf16.mxu0 %v2638_v23 }
 0x209   :  { %1979 = vmatpush1.bf16.xpose.msra.mxu1 %v2633_v24 }
 0x20a   :  { %1980 = vmatprep.subr.bf16.mxu1 %v2641_v25 }
 0x20d   :  { %1958 = vmatpush2.bf16.xpose.msra.mxu0 %v2636_v26 }
 0x20e   :  { %1959 = vmatprep.subr.bf16.mxu0 %v2644_v27 }
 0x211   :  { %1981 = vmatpush1.bf16.xpose.msra.mxu1 %v2639_v28 }
 0x212   :  { %1982 = vmatprep.subr.bf16.mxu1 %v2647_v29 }
 0x215   :  { %1960 = vmatpush2.bf16.xpose.msra.mxu0 %v2642_v30 }
 0x216   :  { %1961 = vmatprep.subr.bf16.mxu0 %v2650_v31 }
 0x219   :  { %1983 = vmatpush1.bf16.xpose.msra.mxu1 %v2645_v32 }
 0x21a   :  { %1984 = vmatprep.subr.bf16.mxu1 %v2653_v33 }
 0x21d   :  { %1962 = vmatpush2.bf16.xpose.msra.mxu0 %v2648_v34 }
 0x21e   :  { %1963 = vmatprep.subr.bf16.mxu0 %v2656_v35 }
 0x221   :  { %1985 = vmatpush1.bf16.xpose.msra.mxu1 %v2651_v37 }
 0x222   :  { %1986 = vmatprep.subr.bf16.mxu1 %v2659_v38 }
 0x225   :  { %1964 = vmatpush2.bf16.xpose.msra.mxu0 %v2654_v39 }
 0x226   :  { %1965 = vmatprep.subr.bf16.mxu0 %v2662_v40 }
 0x229   :  { %1987 = vmatpush1.bf16.xpose.msra.mxu1 %v2657_v44 }
 0x22a   :  { %1988 = vmatprep.subr.bf16.mxu1 %v2665_v45 }
 0x22d   :  { %1966 = vmatpush2.bf16.xpose.msra.mxu0 %v2660_v46 }
 0x231   :  { %1989 = vmatpush1.bf16.xpose.msra.mxu1 %v2663_v47 }
 0x232   :  { %1990 = vmatprep.subr.bf16.mxu1 %v2668_v48 }
 0x234   :  { %1968 = vmatmul.mubr.bf16.vlgmr.msra.gmra.mxu0 %v2911_v36  ;;  %v2681_v36 = vld [vmem:[#allocation8 + $0x368] ss:$16 sps:$4 sm:$0xff]  }
 0x239   :  { %1991 = vmatpush1.bf16.xpose.msra.mxu1 %v2666_v49 }
 0x23a   :  { %1992 = vmatprep.subr.bf16.mxu1 %v2671_v50 }
 0x241   :  { %1993 = vmatpush2.bf16.xpose.msra.mxu1 %v2669_v51 }
 0x242   :  { %1994 = vmatprep.subr.bf16.mxu1 %v2674_v52 }
 0x249   :  { %1995 = vmatpush2.bf16.xpose.msra.mxu1 %v2672_v53 }
 0x24a   :  { %1996 = vmatprep.subr.bf16.mxu1 %v2677_v54 }
 0x251   :  { %1997 = vmatpush2.bf16.xpose.msra.mxu1 %v2675_v56 }
 0x252   :  { %1998 = vmatprep.subr.bf16.mxu1 %v2680_v58 }
 0x259   :  { %1999 = vmatpush2.bf16.xpose.msra.mxu1 %v2678_v59 }
 0x25a   :  { %2000 = vmatprep.subr.bf16.mxu1 %v2683_v60 }
 0x261   :  { %2001 = vmatpush2.bf16.xpose.msra.mxu1 %v2681_v36 }
 0x262   :  { %2002 = vmatprep.subr.bf16.mxu1 %v2686_v61 }
 0x269   :  { %2003 = vmatpush2.bf16.xpose.msra.mxu1 %v2684_v62 }
 0x26a   :  { %2004 = vmatprep.subr.bf16.mxu1 %v2689_v63 }
 0x271   :  { %2005 = vmatpush2.bf16.xpose.msra.mxu1 %v2687_v0 }
 0x272   :  { %2006 = vmatprep.subr.bf16.mxu1 %v2692_v1 }
 0x274   :  { %v1887_v2 = vpop.f32.mrf.mxu0 }
 0x275   :  { %v1888_v12 = vadd.f32 %v1887_v2, %v1196_v10 }
 0x276   :  { %v1889_v4 = vpop.f32.mrf.mxu0 }
 0x277   :  { %v1890_v14 = vadd.f32 %v1889_v4, %v1200_v11 }
 0x278   :  { %v1891_v5 = vpop.f32.mrf.mxu0 }
 0x279   :  { %2007 = vmatpush2.bf16.xpose.msra.mxu1 %v2690_v3 }
 0x27a   :  { %v1892_v6 = vpop.f32.mrf.mxu0 }
 0x280   :  { %2009 = vmatmul.mubr.bf16.vlgmr.msra.gmra.mxu1 %v2923_v21 }
 0x2c0   :  { %v1928_v13 = vpop.f32.mrf.mxu1 }
 0x2c1   :  { %v1929_v15 = vadd.f32 %v1928_v13, %v1888_v12 }
 0x2c2   :  { %v1930_v16 = vpop.f32.mrf.mxu1 }
 0x2c3   :  { %2017 = vst [vmem:[#allocation10] sm:$0xff] %v1929_v15  ;;  %v1931_v17 = vadd.f32 %v1930_v16, %v1890_v14 }
 0x2c4   :  { %v1932_v43 = vpop.f32.mrf.mxu1 }
 0x2c5   :  { %2018 = vst [vmem:[#allocation10 + $0x8] sm:$0xff] %v1931_v17 }
 0x2c6   :  { %v1933_v18 = vpop.f32.mrf.mxu1 }
 0x2f4   :  { %v1969_v19 = vpop.f32.mrf.mxu0 }
 0x2f5   :  { %v1970_v22 = vadd.f32 %v1969_v19, %v1204_v7 }
 0x2f6   :  { %v1971_v20 = vpop.f32.mrf.mxu0 }
 0x2f7   :  { %v1972_v24 = vadd.f32 %v1971_v20, %v1208_v42 }
 0x2f8   :  { %v1973_v21 = vpop.f32.mrf.mxu0 }
 0x2fa   :  { %v1974_v8 = vpop.f32.mrf.mxu0 }
 0x340   :  { %v2010_v23 = vpop.f32.mrf.mxu1 }
 0x341   :  { %v2011_v25 = vadd.f32 %v2010_v23, %v1970_v22 }
 0x342   :  { %v2012_v26 = vpop.f32.mrf.mxu1 }
 0x343   :  { %2019 = vst [vmem:[#allocation10 + $0x10] sm:$0xff] %v2011_v25  ;;  %v2013_v27 = vadd.f32 %v2012_v26, %v1972_v24 }
 0x344   :  { %v2014_v28 = vpop.f32.mrf.mxu1 }
 0x345   :  { %2020 = vst [vmem:[#allocation10 + $0x18] sm:$0xff] %v2013_v27 }
 0x346   :  { %v2015_v29 = vpop.f32.mrf.mxu1 }
 0x347   :  { %2784 = shalt.err (!%p2781_p10)
}
 0x348   :  { %2030 = dma.vmem_to_hbm [thread:$0]  %s2028_s18, 512, %s2948_s6, [#allocation4]  }
 0x349   :  { %2799 = dma.done.wait [#allocation4], 512  }
 0x34a   :  { %2800 = vsyncadd [#allocation4], 4294966784 }
 0x34b   :  { %2034 = vsyncpa [#allocation3], 1 }
 0x34c   :  { %2035 = vsyncpa [#allocation6], 1 }
 0x34d   :  { %2036 = vsyncpa [#allocation9], 1 }
 0x34e   :  { %2037 = vsyncpa [#allocation4], 1 }

</bundles_post_ra>
